<compile_context>
chip_gen: v6e
topology: v6e:2x2x1
jax: 0.10.0
libtpu: 0.0.40
codegen_flags: <defaults>
</compile_context>

<pallas_src>
import functools

import jax
import jax.numpy as jnp
from jax.experimental import pallas as pl
from jax.experimental.pallas import tpu as pltpu


_LANES = 128
_SUBLANES = 8
_LHS_BUF_BYTES = 8 * 1024 * 1024   # per-pipeline-buffer budget for the patch tile


def _round_up(v, m):
    return (v + m - 1) // m * m


def _num_core_splits():
    """2 on multi-TensorCore chips (v4/v5p/v7x), 1 on single-TC v5e/v6e."""
    try:
        kind = jax.devices()[0].device_kind.lower()
    except Exception:
        return 1
    if "lite" in kind or "v5e" in kind or "v6e" in kind:
        return 1
    return 2


# ----------------------------- Pallas kernel --------------------------------


def _perceptual_loss_kernel(pxy_ref, w_ref, b_ref, out_ref):
    """Fused feature-extraction + squared-difference partial-sum kernel.

    pxy_ref : (tm, 2K)    K-packed patches: per channel, 9 x-taps then 9 y-taps.
    w_ref   : (2K, 2*Fn)  block-diagonal conv weight [[W, 0], [0, W]] (invariant).
    b_ref   : (1, 2*Fn)   conv bias duplicated for x/y halves, zero pad lanes.
    out_ref : (8, Fn)     per-core partial sums, resident across the inner axis.
    """
    j = pl.program_id(1)

    @pl.when(j == 0)
    def _():
        out_ref[...] = jnp.zeros_like(out_ref)

    # One MXU launch per step produces [f_x | f_y]: N = 2*Fn = 256 fills the
    # 256-wide MXU on v6e/v7x and halves vmatmul pushes vs two separate dots.
    f = jnp.dot(pxy_ref[...], w_ref[...], preferred_element_type=jnp.float32)
    f = jnp.maximum(f + b_ref[...], 0.0)          # bias + ReLU (VPU, co-issued)

    fn = out_ref.shape[-1]
    d = f[:, :fn] - f[:, fn:]                     # 128-lane-aligned slice diff
    dd = d * d
    # Full-vreg (8, Fn) accumulate: pure VALU adds + unmasked store, no XLU.
    out_ref[...] += jnp.sum(
        dd.reshape(dd.shape[0] // out_ref.shape[0], out_ref.shape[0], fn), axis=0)


def _pallas_perceptual_loss(pxy, w_bd, b_row, *, tile_m):
    """pxy: (M, 2K); w_bd: (2K, 2Fn); b_row: (1, 2Fn) f32 -> scalar loss."""
    M, k2 = pxy.shape
    fn = b_row.shape[1] // 2
    nc = _num_core_splits()

    # Row tile: largest that fits the per-buffer VMEM budget (keeps double
    # buffering small even for large C / v7x's 64 MiB VMEM), rounded to
    # sublanes, clamped to the per-core share of M for tiny inputs.
    tile_m = max(_SUBLANES, (tile_m // _SUBLANES) * _SUBLANES)
    bytes_per_row = k2 * jnp.dtype(pxy.dtype).itemsize
    tm_budget = max(_SUBLANES,
                    (_LHS_BUF_BYTES // bytes_per_row) // _SUBLANES * _SUBLANES)
    tm = min(tile_m, tm_budget, _round_up(pl.cdiv(M, nc), _SUBLANES))
    T = pl.cdiv(M, nc * tm)                       # inner (reduction) tiles/core
    m_pad = nc * T * tm
    if m_pad != M:
        # Zero rows give identical (bias-only) features for x and y -> zero diff.
        pxy = jnp.pad(pxy, ((0, m_pad - M), (0, 0)))

    partials = pl.pallas_call(
        _perceptual_loss_kernel,
        out_shape=jax.ShapeDtypeStruct((nc * _SUBLANES, fn), jnp.float32),
        grid_spec=pltpu.PrefetchScalarGridSpec(
            num_scalar_prefetch=0,
            grid=(nc, T),
            in_specs=[
                pl.BlockSpec((tm, k2), lambda c, j: (c * T + j, 0)),
                pl.BlockSpec((k2, 2 * fn), lambda c, j: (0, 0)),   # invariant
                pl.BlockSpec((1, 2 * fn), lambda c, j: (0, 0)),    # invariant
            ],
            out_specs=pl.BlockSpec((_SUBLANES, fn), lambda c, j: (c, 0)),
        ),
        compiler_params=pltpu.CompilerParams(
            dimension_semantics=("parallel", "arbitrary"),
        ),
    )(pxy, w_bd, b_row)

    # Padded rows / lanes contribute exactly zero; final reduce + sqrt here.
    return jnp.sqrt(jnp.sum(partials))


# ------------------------------ JAX glue -------------------------------------


def _im2col_pair_3x3_same(x_nchw, y_nchw, dtype):
    """Build the K-packed patch matrix (M, 18*C) for BOTH inputs in one fusion.

    Column order: c*18 + t with t in [0,9) the x-taps (kh*3+kw) and t in
    [9,18) the y-taps.  Built directly from the padded NHWC activations, so
    the 9x-expanded data is materialized in HBM exactly once (no concat of
    pre-built px / py tensors).
    """
    n, c, h, w = x_nchw.shape
    cols = []
    for img in (x_nchw, y_nchw):
        nhwc = jnp.transpose(img.astype(dtype), (0, 2, 3, 1))
        xp = jnp.pad(nhwc, ((0, 0), (1, 1), (1, 1), (0, 0)))
        cols += [xp[:, kh:kh + h, kw:kw + w, :]
                 for kh in range(3) for kw in range(3)]
    patches = jnp.stack(cols, axis=-1)            # (N, H, W, C, 18)
    return patches.reshape(n * h * w, c * 18)     # row-major -> col = c*18 + t


def _block_diag_weight(conv_weight, conv_bias, f_pad, dtype):
    """Weight [[W, 0], [0, W]] with rows ordered (c, tap) to match the patches."""
    f, c, _, _ = conv_weight.shape
    w_cf = jnp.transpose(conv_weight.astype(jnp.float32), (1, 2, 3, 0))
    w_cf = w_cf.reshape(c, 9, f)                                  # (C, 9, F)
    w_cf = jnp.pad(w_cf, ((0, 0), (0, 0), (0, f_pad - f)))        # (C, 9, Fn)
    zeros = jnp.zeros_like(w_cf)
    wx = jnp.concatenate([w_cf, zeros], axis=-1)   # x-tap rows -> cols [0, Fn)
    wy = jnp.concatenate([zeros, w_cf], axis=-1)   # y-tap rows -> cols [Fn, 2Fn)
    w_bd = jnp.concatenate([wx, wy], axis=1).reshape(c * 18, 2 * f_pad)

    b = jnp.pad(conv_bias.astype(jnp.float32), (0, f_pad - f))
    b_row = jnp.concatenate([b, b]).reshape(1, 2 * f_pad)
    return w_bd.astype(dtype), b_row               # bias stays f32


@functools.partial(jax.jit, static_argnames=("tile_m", "operand_dtype"))
def perceptual_loss(x, y, conv_weight, conv_bias, *, tile_m=4096,
                    operand_dtype=jnp.float32):
    """x, y: (N, C, H, W); conv_weight: (F, C, 3, 3); conv_bias: (F,).

    operand_dtype=jnp.bfloat16 halves streamed HBM bytes (recommended on v5e);
    accumulation stays f32 either way.
    """
    f = conv_weight.shape[0]
    f_pad = _round_up(f, _LANES)                   # pad feature lanes to 128

    pxy = _im2col_pair_3x3_same(x, y, operand_dtype)
    w_bd, b_row = _block_diag_weight(conv_weight, conv_bias, f_pad, operand_dtype)
    return _pallas_perceptual_loss(pxy, w_bd, b_row, tile_m=tile_m)


def _reference_loss(x, y, conv_weight, conv_bias):
    """Pure-JAX reference: conv3x3 'same' + ReLU features, then Frobenius norm."""
    def feat(inp):
        out = jax.lax.conv_general_dilated(
            inp.astype(jnp.float32), conv_weight.astype(jnp.float32),
            window_strides=(1, 1), padding="SAME",
            dimension_numbers=("NCHW", "OIHW", "NCHW"))
        out = out + conv_bias.reshape(1, -1, 1, 1)
        return jnp.maximum(out, 0.0)
    d = feat(x) - feat(y)
    return jnp.sqrt(jnp.sum(d * d))


# ------------------------------ main ------------------------------------------


if __name__ == "__main__":
    key = jax.random.PRNGKey(0)
    k_x, k_y, k_w, k_b = jax.random.split(key, 4)

    N, C, H, W = 2, 4, 16, 16       # small NCHW inputs
    F = 32                          # synthetic feature channels

    x = jax.random.normal(k_x, (N, C, H, W), dtype=jnp.float32)
    y = jax.random.normal(k_y, (N, C, H, W), dtype=jnp.float32)
    conv_weight = 0.1 * jax.random.normal(k_w, (F, C, 3, 3), dtype=jnp.float32)
    conv_bias = 0.1 * jax.random.normal(k_b, (F,), dtype=jnp.float32)

    loss = perceptual_loss(x, y, conv_weight, conv_bias)
    loss = jax.block_until_ready(loss)

    ref = jax.block_until_ready(_reference_loss(x, y, conv_weight, conv_bias))
    assert jnp.allclose(loss, ref, rtol=1e-4, atol=1e-4), (loss, ref)

    print("KERNEL_OK")
</pallas_src>

<mosaic_0001>
module attributes {stable_mosaic.version = 11 : i64} {
  func.func @_perceptual_loss_kernel(%arg0: i32, %arg1: i32, %arg2: memref<256x72xf32, #tpu.memory_space<vmem>>, %arg3: memref<72x256xf32, #tpu.memory_space<vmem>>, %arg4: memref<1x256xf32, #tpu.memory_space<vmem>>, %arg5: memref<8x128xf32, #tpu.memory_space<vmem>>) attributes {dimension_semantics = [#tpu.dimension_semantics<parallel>, #tpu.dimension_semantics<arbitrary>], iteration_bounds = array<i64: 2, 1>, scalar_prefetch = 0 : i64, scratch_operands = 0 : i64, tpu.core_type = #tpu.core_type<tc>, window_params = [{transform_indices = @transform_0, window_bounds = array<i64: 256, 72>}, {pipeline_mode = #tpu.pipeline_mode<synchronous>, transform_indices = @transform_1, window_bounds = array<i64: 72, 256>}, {pipeline_mode = #tpu.pipeline_mode<synchronous>, transform_indices = @transform_2, window_bounds = array<i64: 1, 256>}, {transform_indices = @transform_3, window_bounds = array<i64: 8, 128>}]} {
    %c0_i32 = arith.constant 0 : i32
    %0 = arith.cmpi eq, %arg1, %c0_i32 : i32
    %1 = arith.extui %0 : i1 to i32
    %c0_i32_0 = arith.constant 0 : i32
    %2 = arith.cmpi ne, %1, %c0_i32_0 : i32
    scf.if %2 {
      %cst_12 = arith.constant 0.000000e+00 : f32
      %20 = vector.broadcast %cst_12 : f32 to vector<8x128xf32>
      %c0_13 = arith.constant 0 : index
      %c0_14 = arith.constant 0 : index
      %21 = vector.load %arg5[%c0_13, %c0_14] : memref<8x128xf32, #tpu.memory_space<vmem>>, vector<8x128xf32>
      tpu.vector_store %arg5[%c0_13, %c0_14], %20 {strides = array<i32>} : memref<8x128xf32, #tpu.memory_space<vmem>>, vector<8x128xf32>,
    } else {
    }
    %c0 = arith.constant 0 : index
    %c0_1 = arith.constant 0 : index
    %3 = vector.load %arg2[%c0, %c0_1] : memref<256x72xf32, #tpu.memory_space<vmem>>, vector<256x72xf32>
    %c0_2 = arith.constant 0 : index
    %c0_3 = arith.constant 0 : index
    %4 = vector.load %arg3[%c0_2, %c0_3] : memref<72x256xf32, #tpu.memory_space<vmem>>, vector<72x256xf32>
    %cst = arith.constant dense<0.000000e+00> : vector<256x256xf32>
    %5 = tpu.matmul %3, %4, %cst {dimension_numbers = #tpu.dot_dimension_numbers<[1], [0], [0], [1], [0, 0, 1, 1], [], []>} : vector<256x72xf32>, vector<72x256xf32>, vector<256x256xf32> -> vector<256x256xf32>
    %c0_4 = arith.constant 0 : index
    %c0_5 = arith.constant 0 : index
    %6 = vector.load %arg4[%c0_4, %c0_5] : memref<1x256xf32, #tpu.memory_space<vmem>>, vector<1x256xf32>
    %7 = vector.broadcast %6 : vector<1x256xf32> to vector<256x256xf32>
    %8 = arith.addf %5, %7 : vector<256x256xf32>
    %cst_6 = arith.constant 0.000000e+00 : f32
    %9 = vector.broadcast %cst_6 : f32 to vector<256x256xf32>
    %10 = arith.maximumf %8, %9 : vector<256x256xf32>
    %11 = vector.extract_strided_slice %10 {offsets = [0, 0], sizes = [256, 128], strides = [1, 1]} : vector<256x256xf32> to vector<256x128xf32>
    %12 = vector.extract_strided_slice %10 {offsets = [0, 128], sizes = [256, 128], strides = [1, 1]} : vector<256x256xf32> to vector<256x128xf32>
    %13 = arith.subf %11, %12 : vector<256x128xf32>
    %14 = arith.mulf %13, %13 : vector<256x128xf32>
    %c0_7 = arith.constant 0 : index
    %c0_8 = arith.constant 0 : index
    %15 = vector.load %arg5[%c0_7, %c0_8] : memref<8x128xf32, #tpu.memory_space<vmem>>, vector<8x128xf32>
    %16 = vector.shape_cast %14 : vector<256x128xf32> to vector<32x8x128xf32>
    %cst_9 = arith.constant dense<0.000000e+00> : vector<8x128xf32>
    %17 = vector.multi_reduction <add>, %16, %cst_9 [0] : vector<32x8x128xf32> to vector<8x128xf32>
    %18 = arith.addf %15, %17 : vector<8x128xf32>
    %c0_10 = arith.constant 0 : index
    %c0_11 = arith.constant 0 : index
    %19 = vector.load %arg5[%c0_10, %c0_11] : memref<8x128xf32, #tpu.memory_space<vmem>>, vector<8x128xf32>
    tpu.vector_store %arg5[%c0_10, %c0_11], %18 {strides = array<i32>} : memref<8x128xf32, #tpu.memory_space<vmem>>, vector<8x128xf32>,
    return
  }
  func.func @transform_0(%arg0: i32, %arg1: i32) -> (i32, i32) {
    %c1_i32 = arith.constant 1 : i32
    %0 = arith.muli %arg0, %c1_i32 : i32
    %1 = arith.addi %0, %arg1 : i32
    %c0_i32 = arith.constant 0 : i32
    %c0_i32_0 = arith.constant 0 : i32
    return %1, %c0_i32 : i32, i32
  }
  func.func @transform_1(%arg0: i32, %arg1: i32) -> (i32, i32) {
    %c0_i32 = arith.constant 0 : i32
    %c0_i32_0 = arith.constant 0 : i32
    %c0_i32_1 = arith.constant 0 : i32
    return %c0_i32, %c0_i32_0 : i32, i32
  }
  func.func @transform_2(%arg0: i32, %arg1: i32) -> (i32, i32) {
    %c0_i32 = arith.constant 0 : i32
    %c0_i32_0 = arith.constant 0 : i32
    %c0_i32_1 = arith.constant 0 : i32
    return %c0_i32, %c0_i32_0 : i32, i32
  }
  func.func @transform_3(%arg0: i32, %arg1: i32) -> (i32, i32) {
    %c0_i32 = arith.constant 0 : i32
    %c0_i32_0 = arith.constant 0 : i32
    return %arg0, %c0_i32 : i32, i32
  }
}

</mosaic_0001>

<bundles_post_ra>
// kernel: perceptual_loss.1
= control target key start
LH: loop header
LB: loop body
LE: loop exit
PB: predicated region body
PF: predicated region fallthrough
CT: control target
= control target key end

     0   :  { %s964_s12 = smov 0   ;;  %s966_s13 = smov 0   ;;  %s1306_s0 = inlined_call_operand.vmem [shape: f32[512,72], index: 0, kind: input, shape index: {}]   ;;  %s1307_s1 = inlined_call_operand.vmem [shape: f32[72,256], index: 1, kind: input, shape index: {}]   ;;  %s1308_s2 = inlined_call_operand.vmem [shape: f32[1,256], index: 2, kind: input, shape index: {}]   ;;  %s1309_s3 = inlined_call_operand.vmem [shape: f32[16,128], index: 3, kind: output, shape index: {}]  }
   0x1   :  { %s968_s14 = smov 0  }
   0x2 LB: > { %s25_s15 = sadd.s32 1, %s937_s13  ;;  %p838_p0 = scmp.ge.s32.totalorder %s941_s14, 1  ;;  %s941_s14 = sphi %s968_s14, %s13_s14   ;;  %s937_s13 = sphi %s966_s13, %s1311_s13   ;;  %s933_s12 = sphi %s964_s12, %s1310_s12  }
   0x3   : > { %p27_p1 = scmp.ge.s32.totalorder %s25_s15, 2  ;;  %p154_p2 = scmp.lt.s32.totalorder %s941_s14, 3 }
   0x5   : > { %s1313_s15 = smov (%p27_p1, %s25_s15), 0  ;;  %p155_p3 = pnand %p838_p0, %p154_p2 }
   0x6   : > { %s839_s22 = sshll.u32 (!%p155_p3), %s933_s12, 5  ;;  %p186_p5 = scmp.lt.s32.totalorder (!%p155_p3), %s933_s12, 1 }
   0x7   : > { %158 = sbr.rel (%p155_p3) target bundleno = 329 (0x149), region = 32  ;;  %p180_p4 = scmp.lt.s32.totalorder (!%p155_p3), %s839_s22, 63 }
   0xc   : > { %v244_v0 = vld [vmem:[%s1307_s1 + $0x88] sm:$0xff]  ;;  %v243_v1 = vld [vmem:[%s1307_s1 + $0x80] sm:$0xff]  ;;  %v242_v2 = vld [vmem:[%s1307_s1 + $0x78] sm:$0xff]  ;;  %v943_v4 = vmov 0.0   ;;  %s1315_s22 = smov (!%p180_p4, %s839_s22), 63  ;;  %vm257_vm0 = vcmask 588800   ;;  %v247_v62 = vlaneseq }
   0xd   : > { %368 = vmatprep.subr.mxu0 %v244_v0  ;;  %v241_v3 = vld [vmem:[%s1307_s1 + $0x70] sm:$0xff]  ;;  %418 = vmatprep.mubr.f32.mxu0 %v943_v4  ;;  %v240_v5 = vld [vmem:[%s1307_s1 + $0x68] sm:$0xff]  ;;  %v239_v6 = vld [vmem:[%s1307_s1 + $0x60] sm:$0xff]  ;;  %s840_s20 = sshll.u32 %s1315_s22, 3  ;;  %s1317_s12 = smov (!%p186_p5, %s933_s12), 1 }
   0xe   : > { %369 = vmatpush1.msra.mxu0 %v243_v1  ;;  %876 = vmatprep.subr.mxu1 %v244_v0  ;;  %v238_v7 = vld [vmem:[%s1307_s1 + $0x58] sm:$0xff]  ;;  %v237_v8 = vld [vmem:[%s1307_s1 + $0x50] sm:$0xff]  ;;  %v236_v9 = vld [vmem:[%s1307_s1 + $0x48] sm:$0xff]  ;;  %s1037_s29 = scalar_lea.vmem %s1306_s0, %s840_s20  ;;  %s841_s9 = sshll.u32 %s1317_s12, 3 }
   0xf   : > { %370 = vmatprep.subr.mxu0 %v242_v2  ;;  %885 = vmatpush1.msra.mxu1 %v243_v1  ;;  %v235_v10 = vld [vmem:[%s1307_s1 + $0x40] sm:$0xff]  ;;  %v234_v11 = vld [vmem:[%s1307_s1 + $0x38] sm:$0xff]  ;;  %v233_v12 = vld [vmem:[%s1307_s1 + $0x30] sm:$0xff]  ;;  %s189_s16 = scalar_lea.vmem %s1309_s3, %s841_s9 }
  0x10   : > { %371 = vmatpush1.msra.mxu0 %v241_v3  ;;  %877 = vmatprep.subr.mxu1 %v242_v2  ;;  %v232_v13 = vld [vmem:[%s1307_s1 + $0x28] sm:$0xff]  ;;  %v231_v14 = vld [vmem:[%s1307_s1 + $0x20] sm:$0xff]  ;;  %v230_v15 = vld [vmem:[%s1307_s1 + $0x18] sm:$0xff] }
  0x11   : > { %372 = vmatprep.subr.mxu0 %v240_v5  ;;  %886 = vmatpush1.msra.mxu1 %v241_v3  ;;  %v229_v16 = vld [vmem:[%s1307_s1 + $0x10] sm:$0xff]  ;;  %v228_v17 = vld [vmem:[%s1307_s1 + $0x8] sm:$0xff]  ;;  %v227_v18 = vld [vmem:[%s1307_s1] sm:$0xff]  ;;  %v248_v3 = vshrl.u32 %v247_v62, 7 }
  0x12   : > { %373 = vmatpush1.msra.mxu0 %v239_v6  ;;  %878 = vmatprep.subr.mxu1 %v240_v5  ;;  %v195_v19 = vld [vmem:[%s1037_s29] sm:$0xff]  ;;  %v196_v21 = vld [vmem:[%s1037_s29 + $0x8] sm:$0xff]  ;;  %v197_v23 = vld [vmem:[%s1037_s29 + $0x10] sm:$0xff] }
  0x13   : > { %374 = vmatprep.subr.mxu0 %v238_v7  ;;  %887 = vmatpush1.msra.mxu1 %v239_v6  ;;  %v211_v20 = vld [vmem:[%s1037_s29 + $0x80] sm:$0xff]  ;;  %v212_v22 = vld [vmem:[%s1037_s29 + $0x88] sm:$0xff]  ;;  %v213_v24 = vld [vmem:[%s1037_s29 + $0x90] sm:$0xff]  ;;  %v253_v6 = vsub.s32 1, %v248_v3 }
  0x14   : > { %375 = vmatpush1.msra.mxu0 %v237_v8  ;;  %879 = vmatprep.subr.mxu1 %v238_v7  ;;  %v198_v25 = vld [vmem:[%s1037_s29 + $0x18] sm:$0xff]  ;;  %v199_v27 = vld [vmem:[%s1037_s29 + $0x20] sm:$0xff]  ;;  %v200_v29 = vld [vmem:[%s1037_s29 + $0x28] sm:$0xff] }
  0x15   : > { %376 = vmatprep.subr.mxu0 %v236_v9  ;;  %888 = vmatpush1.msra.mxu1 %v237_v8  ;;  %v214_v26 = vld [vmem:[%s1037_s29 + $0x98] sm:$0xff]  ;;  %v215_v28 = vld [vmem:[%s1037_s29 + $0xa0] sm:$0xff]  ;;  %v216_v30 = vld [vmem:[%s1037_s29 + $0xa8] sm:$0xff] }
  0x16   : > { %377 = vmatpush1.msra.mxu0 %v235_v10  ;;  %880 = vmatprep.subr.mxu1 %v236_v9  ;;  %v201_v31 = vld [vmem:[%s1037_s29 + $0x30] sm:$0xff]  ;;  %v202_v33 = vld [vmem:[%s1037_s29 + $0x38] sm:$0xff]  ;;  %v203_v35 = vld [vmem:[%s1037_s29 + $0x40] sm:$0xff]  ;;  %v249_v9 = vsub.s32 0, %v248_v3 }
  0x17   : > { %378 = vmatprep.subr.mxu0 %v234_v11  ;;  %889 = vmatpush1.msra.mxu1 %v235_v10  ;;  %v217_v32 = vld [vmem:[%s1037_s29 + $0xb0] sm:$0xff]  ;;  %v218_v34 = vld [vmem:[%s1037_s29 + $0xb8] sm:$0xff]  ;;  %v219_v36 = vld [vmem:[%s1037_s29 + $0xc0] sm:$0xff] }
  0x18   : > { %379 = vmatpush1.msra.mxu0 %v233_v12  ;;  %881 = vmatprep.subr.mxu1 %v234_v11  ;;  %v204_v37 = vld [vmem:[%s1037_s29 + $0x48] sm:$0xff]  ;;  %v205_v39 = vld [vmem:[%s1037_s29 + $0x50] sm:$0xff]  ;;  %v206_v41 = vld [vmem:[%s1037_s29 + $0x58] sm:$0xff] }
  0x19   : > { %380 = vmatprep.subr.mxu0 %v232_v13  ;;  %890 = vmatpush1.msra.mxu1 %v233_v12  ;;  %v220_v38 = vld [vmem:[%s1037_s29 + $0xc8] sm:$0xff]  ;;  %v221_v40 = vld [vmem:[%s1037_s29 + $0xd0] sm:$0xff]  ;;  %v222_v42 = vld [vmem:[%s1037_s29 + $0xd8] sm:$0xff] }
  0x1a   : > { %381 = vmatpush1.msra.mxu0 %v231_v14  ;;  %882 = vmatprep.subr.mxu1 %v232_v13  ;;  %v207_v43 = vld [vmem:[%s1037_s29 + $0x60] sm:$0xff]  ;;  %v208_v45 = vld [vmem:[%s1037_s29 + $0x68] sm:$0xff]  ;;  %v209_v47 = vld [vmem:[%s1037_s29 + $0x70] sm:$0xff] }
  0x1b   : > { %382 = vmatprep.subr.mxu0 %v230_v15  ;;  %891 = vmatpush1.msra.mxu1 %v231_v14  ;;  %v223_v44 = vld [vmem:[%s1037_s29 + $0xe0] sm:$0xff]  ;;  %v224_v46 = vld [vmem:[%s1037_s29 + $0xe8] sm:$0xff]  ;;  %v225_v48 = vld [vmem:[%s1037_s29 + $0xf0] sm:$0xff] }
  0x1c   : > { %383 = vmatpush1.msra.mxu0 %v229_v16  ;;  %883 = vmatprep.subr.mxu1 %v230_v15  ;;  %v210_v49 = vld [vmem:[%s1037_s29 + $0x78] sm:$0xff]  ;;  %v245_v12 = vld [vmem:[%s1308_s2] sm:$0x3] }
  0x1d   : > { %384 = vmatprep.subr.mxu0 %v228_v17  ;;  %892 = vmatpush1.msra.mxu1 %v229_v16  ;;  %v226_v50 = vld [vmem:[%s1037_s29 + $0xf8] sm:$0xff]  ;;  %v1163_v13 = vrot.slane %v245_v12, %v253_v6  ;;  %v1167_v16 = vrot.slane %v245_v12, %v249_v9 }
  0x1e   : > { %385 = vmatpush1.msra.mxu0 %v227_v18  ;;  %884 = vmatprep.subr.mxu1 %v228_v17 }
  0x1f   : > { %842 = vmatmul.mubr.msk.f32.vlgmr.msra.gmra.mxu0 %vm257_vm0, %v195_v19  ;;  %893 = vmatpush1.msra.mxu1 %v227_v18 }
  0x20   : > { %424 = vmatprep.mubr.f32.mxu0 %v943_v4  ;;  %514 = vmatprep.mubr.f32.mxu1 %v943_v4 }
  0x21   : > { %858 = vmatmul.mubr.msk.f32.vlgmr.msra.gmra.mxu1 %vm257_vm0, %v211_v20 }
  0x22   : > { %520 = vmatprep.mubr.f32.mxu1 %v943_v4 }
  0x23   : > { %843 = vmatmul.mubr.msk.f32.gmra.mxu0 %vm257_vm0, %v196_v21 }
  0x24   : > { %430 = vmatprep.mubr.f32.mxu0 %v943_v4 }
  0x25   : > { %859 = vmatmul.mubr.msk.f32.gmra.mxu1 %vm257_vm0, %v212_v22 }
  0x26   : > { %526 = vmatprep.mubr.f32.mxu1 %v943_v4 }
  0x27   : > { %844 = vmatmul.mubr.msk.f32.gmra.mxu0 %vm257_vm0, %v197_v23 }
  0x28   : > { %436 = vmatprep.mubr.f32.mxu0 %v943_v4 }
  0x29   : > { %860 = vmatmul.mubr.msk.f32.gmra.mxu1 %vm257_vm0, %v213_v24 }
  0x2a   : > { %532 = vmatprep.mubr.f32.mxu1 %v943_v4 }
  0x2b   : > { %845 = vmatmul.mubr.msk.f32.gmra.mxu0 %vm257_vm0, %v198_v25 }
  0x2c   : > { %442 = vmatprep.mubr.f32.mxu0 %v943_v4 }
  0x2d   : > { %861 = vmatmul.mubr.msk.f32.gmra.mxu1 %vm257_vm0, %v214_v26 }
  0x2e   : > { %538 = vmatprep.mubr.f32.mxu1 %v943_v4 }
  0x2f   : > { %846 = vmatmul.mubr.msk.f32.gmra.mxu0 %vm257_vm0, %v199_v27 }
  0x30   : > { %448 = vmatprep.mubr.f32.mxu0 %v943_v4 }
  0x31   : > { %862 = vmatmul.mubr.msk.f32.gmra.mxu1 %vm257_vm0, %v215_v28 }
  0x32   : > { %544 = vmatprep.mubr.f32.mxu1 %v943_v4 }
  0x33   : > { %847 = vmatmul.mubr.msk.f32.gmra.mxu0 %vm257_vm0, %v200_v29 }
  0x34   : > { %454 = vmatprep.mubr.f32.mxu0 %v943_v4 }
  0x35   : > { %863 = vmatmul.mubr.msk.f32.gmra.mxu1 %vm257_vm0, %v216_v30 }
  0x36   : > { %550 = vmatprep.mubr.f32.mxu1 %v943_v4 }
  0x37   : > { %848 = vmatmul.mubr.msk.f32.gmra.mxu0 %vm257_vm0, %v201_v31 }
  0x38   : > { %460 = vmatprep.mubr.f32.mxu0 %v943_v4 }
  0x39   : > { %864 = vmatmul.mubr.msk.f32.gmra.mxu1 %vm257_vm0, %v217_v32 }
  0x3a   : > { %556 = vmatprep.mubr.f32.mxu1 %v943_v4 }
  0x3b   : > { %849 = vmatmul.mubr.msk.f32.gmra.mxu0 %vm257_vm0, %v202_v33 }
  0x3c   : > { %466 = vmatprep.mubr.f32.mxu0 %v943_v4 }
  0x3d   : > { %865 = vmatmul.mubr.msk.f32.gmra.mxu1 %vm257_vm0, %v218_v34 }
  0x3e   : > { %562 = vmatprep.mubr.f32.mxu1 %v943_v4 }
  0x3f   : > { %850 = vmatmul.mubr.msk.f32.gmra.mxu0 %vm257_vm0, %v203_v35 }
  0x40   : > { %472 = vmatprep.mubr.f32.mxu0 %v943_v4 }
  0x41   : > { %866 = vmatmul.mubr.msk.f32.gmra.mxu1 %vm257_vm0, %v219_v36 }
  0x42   : > { %568 = vmatprep.mubr.f32.mxu1 %v943_v4 }
  0x43   : > { %851 = vmatmul.mubr.msk.f32.gmra.mxu0 %vm257_vm0, %v204_v37 }
  0x44   : > { %478 = vmatprep.mubr.f32.mxu0 %v943_v4 }
  0x45   : > { %867 = vmatmul.mubr.msk.f32.gmra.mxu1 %vm257_vm0, %v220_v38 }
  0x46   : > { %574 = vmatprep.mubr.f32.mxu1 %v943_v4 }
  0x47   : > { %852 = vmatmul.mubr.msk.f32.gmra.mxu0 %vm257_vm0, %v205_v39 }
  0x48   : > { %484 = vmatprep.mubr.f32.mxu0 %v943_v4 }
  0x49   : > { %868 = vmatmul.mubr.msk.f32.gmra.mxu1 %vm257_vm0, %v221_v40 }
  0x4a   : > { %580 = vmatprep.mubr.f32.mxu1 %v943_v4 }
  0x4b   : > { %853 = vmatmul.mubr.msk.f32.gmra.mxu0 %vm257_vm0, %v206_v41 }
  0x4c   : > { %490 = vmatprep.mubr.f32.mxu0 %v943_v4 }
  0x4d   : > { %869 = vmatmul.mubr.msk.f32.gmra.mxu1 %vm257_vm0, %v222_v42 }
  0x4e   : > { %586 = vmatprep.mubr.f32.mxu1 %v943_v4 }
  0x4f   : > { %854 = vmatmul.mubr.msk.f32.gmra.mxu0 %vm257_vm0, %v207_v43 }
  0x50   : > { %496 = vmatprep.mubr.f32.mxu0 %v943_v4 }
  0x51   : > { %870 = vmatmul.mubr.msk.f32.gmra.mxu1 %vm257_vm0, %v223_v44 }
  0x52   : > { %592 = vmatprep.mubr.f32.mxu1 %v943_v4 }
  0x53   : > { %855 = vmatmul.mubr.msk.f32.gmra.mxu0 %vm257_vm0, %v208_v45 }
  0x54   : > { %502 = vmatprep.mubr.f32.mxu0 %v943_v4 }
  0x55   : > { %871 = vmatmul.mubr.msk.f32.gmra.mxu1 %vm257_vm0, %v224_v46 }
  0x56   : > { %598 = vmatprep.mubr.f32.mxu1 %v943_v4 }
  0x57   : > { %856 = vmatmul.mubr.msk.f32.gmra.mxu0 %vm257_vm0, %v209_v47 }
  0x58   : > { %508 = vmatprep.mubr.f32.mxu0 %v943_v4 }
  0x59   : > { %872 = vmatmul.mubr.msk.f32.gmra.mxu1 %vm257_vm0, %v225_v48 }
  0x5a   : > { %604 = vmatprep.mubr.f32.mxu1 %v943_v4 }
  0x5b   : > { %857 = vmatmul.mubr.msk.f32.gmra.mxu0 %vm257_vm0, %v210_v49 }
  0x5d   : > { %873 = vmatmul.mubr.msk.f32.gmra.mxu1 %vm257_vm0, %v226_v50 }
  0xdf   : > { %v420_v51 = vpop.f32.mrf.mxu0 }
  0xe0   : > { %v421_v25 = vadd.f32 %v420_v51, %v1167_v16 }
  0xe1   : > { %v422_v52 = vpop.f32.mrf.mxu0  ;;  %v1140_v53 = vpop.f32.mrf.mxu1 }
  0xe2   : > { %v423_v20 = vadd.f32 %v422_v52, %v1163_v13  ;;  %v611_v38 = vmax.f32 %v421_v25, 0.0 }
  0xe3   : > { %v426_v54 = vpop.f32.mrf.mxu0  ;;  %v1142_v55 = vpop.f32.mrf.mxu1 }
  0xe4   : > { %v427_v21 = vadd.f32 %v426_v54, %v1167_v16  ;;  %v612_v31 = vmax.f32 %v423_v20, 0.0 }
  0xe5   : > { %v428_v56 = vpop.f32.mrf.mxu0  ;;  %v1144_v57 = vpop.f32.mrf.mxu1 }
  0xe6   : > { %v429_v17 = vadd.f32 %v428_v56, %v1163_v13  ;;  %v613_v32 = vmax.f32 %v427_v21, 0.0  ;;  %v675_v46 = vsub.f32 %v611_v38, %v612_v31 }
  0xe7   : > { %v432_v58 = vpop.f32.mrf.mxu0  ;;  %v1146_v59 = vpop.f32.mrf.mxu1 }
  0xe8   : > { %v614_v26 = vmax.f32 %v429_v17, 0.0  ;;  %v433_v27 = vadd.f32 %v432_v58, %v1167_v16 }
  0xe9   : > { %v434_v60 = vpop.f32.mrf.mxu0  ;;  %v1148_v61 = vpop.f32.mrf.mxu1 }
  0xea   : > { %v435_v22 = vadd.f32 %v434_v60, %v1163_v13  ;;  %v676_v39 = vsub.f32 %v613_v32, %v614_v26  ;;  %v615_v40 = vmax.f32 %v433_v27, 0.0 }
  0xeb   : > { %v438_v63 = vpop.f32.mrf.mxu0  ;;  %v1150_v0 = vpop.f32.mrf.mxu1 }
  0xec   : > { %v616_v33 = vmax.f32 %v435_v22, 0.0  ;;  %v439_v36 = vadd.f32 %v438_v63, %v1167_v16  ;;  %v708_v56 = vmul.f32 %v676_v39, %v676_v39 }
  0xed   : > { %v440_v1 = vpop.f32.mrf.mxu0  ;;  %v1152_v2 = vpop.f32.mrf.mxu1 }
  0xee   : > { %v441_v30 = vadd.f32 %v440_v1, %v1163_v13  ;;  %v677_v47 = vsub.f32 %v615_v40, %v616_v33  ;;  %v617_v50 = vmax.f32 %v439_v36, 0.0 }
  0xef   : > { %v444_v4 = vpop.f32.mrf.mxu0  ;;  %v1154_v5 = vpop.f32.mrf.mxu1 }
  0xf0   : > { %v618_v43 = vmax.f32 %v441_v30, 0.0  ;;  %v445_v44 = vadd.f32 %v444_v4, %v1167_v16  ;;  %v707_v4 = vmul.f32 %v675_v46, %v675_v46  ;;  %v709_v12 = vmul.f32 %v677_v47, %v677_v47 }
  0xf1   : > { %v446_v7 = vpop.f32.mrf.mxu0  ;;  %v1156_v8 = vpop.f32.mrf.mxu1 }
  0xf2   : > { %v447_v37 = vadd.f32 %v446_v7, %v1163_v13  ;;  %v678_v62 = vsub.f32 %v617_v50, %v618_v43  ;;  %v619_v63 = vmax.f32 %v445_v44, 0.0  ;;  %v740_v25 = vadd.f32 %v708_v56, %v707_v4 }
  0xf3   : > { %v450_v10 = vpop.f32.mrf.mxu0  ;;  %v1158_v11 = vpop.f32.mrf.mxu1 }
  0xf4   : > { %v620_v51 = vmax.f32 %v447_v37, 0.0  ;;  %v451_v52 = vadd.f32 %v450_v10, %v1167_v16  ;;  %v710_v26 = vmul.f32 %v678_v62, %v678_v62  ;;  %v741_v36 = vadd.f32 %v740_v25, %v709_v12 }
  0xf5   : > { %v452_v14 = vpop.f32.mrf.mxu0  ;;  %v1165_v15 = vpop.f32.mrf.mxu1 }
  0xf6   : > { %v453_v45 = vadd.f32 %v452_v14, %v1163_v13  ;;  %v679_v14 = vsub.f32 %v619_v63, %v620_v51  ;;  %v621_v10 = vmax.f32 %v451_v52, 0.0 }
  0xf7   : > { %v456_v18 = vpop.f32.mrf.mxu0  ;;  %v1170_v19 = vpop.f32.mrf.mxu1 }
  0xf8   : > { %v622_v1 = vmax.f32 %v453_v45, 0.0  ;;  %v457_v3 = vadd.f32 %v456_v18, %v1167_v16  ;;  %v711_v37 = vmul.f32 %v679_v14, %v679_v14  ;;  %v742_v45 = vadd.f32 %v741_v36, %v710_v26 }
  0xf9   : > { %v458_v23 = vpop.f32.mrf.mxu0  ;;  %v1175_v24 = vpop.f32.mrf.mxu1 }
  0xfa   : > { %v459_v54 = vadd.f32 %v458_v23, %v1163_v13  ;;  %v680_v18 = vsub.f32 %v621_v10, %v622_v1  ;;  %v623_v27 = vmax.f32 %v457_v3, 0.0 }
  0xfb   : > { %v462_v28 = vpop.f32.mrf.mxu0  ;;  %v1179_v29 = vpop.f32.mrf.mxu1 }
  0xfc   : > { %v624_v17 = vmax.f32 %v459_v54, 0.0  ;;  %v463_v20 = vadd.f32 %v462_v28, %v1167_v16  ;;  %v712_v46 = vmul.f32 %v680_v18, %v680_v18  ;;  %v743_v54 = vadd.f32 %v742_v45, %v711_v37 }
  0xfd   : > { %v464_v34 = vpop.f32.mrf.mxu0  ;;  %v1182_v35 = vpop.f32.mrf.mxu1 }
  0xfe   : > { %v465_v6 = vadd.f32 %v464_v34, %v1163_v13  ;;  %v681_v28 = vsub.f32 %v623_v27, %v624_v17  ;;  %v625_v38 = vmax.f32 %v463_v20, 0.0 }
  0xff   : > { %v468_v41 = vpop.f32.mrf.mxu0  ;;  %v1186_v42 = vpop.f32.mrf.mxu1 }
 0x100   : > { %v626_v30 = vmax.f32 %v465_v6, 0.0  ;;  %v469_v31 = vadd.f32 %v468_v41, %v1167_v16  ;;  %v713_v62 = vmul.f32 %v681_v28, %v681_v28  ;;  %v744_v6 = vadd.f32 %v743_v54, %v712_v46 }
 0x101   : > { %v470_v48 = vpop.f32.mrf.mxu0  ;;  %v1190_v49 = vpop.f32.mrf.mxu1 }
 0x102   : > { %v471_v21 = vadd.f32 %v470_v48, %v1163_v13  ;;  %v682_v47 = vsub.f32 %v625_v38, %v626_v30  ;;  %v627_v48 = vmax.f32 %v469_v31, 0.0  ;;  %v745_v25 = vadd.f32 %v744_v6, %v713_v62 }
 0x103   : > { %v474_v58 = vpop.f32.mrf.mxu0  ;;  %v1194_v60 = vpop.f32.mrf.mxu1 }
 0x104   : > { %v628_v39 = vmax.f32 %v471_v21, 0.0  ;;  %v475_v40 = vadd.f32 %v474_v58, %v1167_v16 }
 0x105   : > { %v476_v7 = vpop.f32.mrf.mxu0  ;;  %v1198_v9 = vpop.f32.mrf.mxu1 }
 0x106   : > { %v477_v32 = vadd.f32 %v476_v7, %v1163_v13  ;;  %v683_v63 = vsub.f32 %v627_v48, %v628_v39  ;;  %v629_v1 = vmax.f32 %v475_v40, 0.0  ;;  %v714_v7 = vmul.f32 %v682_v47, %v682_v47 }
 0x107   : > { %v480_v22 = vpop.f32.mrf.mxu0  ;;  %v1202_v23 = vpop.f32.mrf.mxu1 }
 0x108   : > { %v630_v41 = vmax.f32 %v477_v32, 0.0  ;;  %v481_v50 = vadd.f32 %v480_v22, %v1167_v16  ;;  %v715_v26 = vmul.f32 %v683_v63, %v683_v63 }
 0x109   : > { %v482_v33 = vpop.f32.mrf.mxu0  ;;  %v1206_v34 = vpop.f32.mrf.mxu1 }
 0x10a   : > { %v483_v43 = vadd.f32 %v482_v33, %v1163_v13  ;;  %v684_v12 = vsub.f32 %v629_v1, %v630_v41  ;;  %v631_v14 = vmax.f32 %v481_v50, 0.0  ;;  %v746_v33 = vadd.f32 %v745_v25, %v714_v7 }
 0x10b   : > { %v486_v44 = vpop.f32.mrf.mxu0  ;;  %v1211_v52 = vpop.f32.mrf.mxu1  ;;  %v517_v50 = vadd.f32 %v1140_v53, %v1167_v16 }
 0x10c   : > { %v632_v58 = vmax.f32 %v483_v43, 0.0  ;;  %v487_v4 = vadd.f32 %v486_v44, %v1167_v16  ;;  %v716_v36 = vmul.f32 %v684_v12, %v684_v12  ;;  %v747_v43 = vadd.f32 %v746_v33, %v715_v26 }
 0x10d   : > { %v488_v51 = vpop.f32.mrf.mxu0  ;;  %v1215_v17 = vpop.f32.mrf.mxu1  ;;  %v537_v33 = vadd.f32 %v1154_v5, %v1163_v13 }
 0x10e   : > { %v489_v56 = vadd.f32 %v488_v51, %v1163_v13  ;;  %v685_v18 = vsub.f32 %v631_v14, %v632_v58  ;;  %v633_v30 = vmax.f32 %v487_v4, 0.0  ;;  %v519_v51 = vadd.f32 %v1142_v55, %v1163_v13 }
 0x10f   : > { %v492_v3 = vpop.f32.mrf.mxu0  ;;  %v1220_v28 = vpop.f32.mrf.mxu1  ;;  %v748_v54 = vadd.f32 %v747_v43, %v716_v36  ;;  %v525_v4 = vadd.f32 %v1146_v59, %v1163_v13  ;;  %v541_v43 = vadd.f32 %v1156_v8, %v1167_v16  ;;  %v650_v5 = vmax.f32 %v537_v33, 0.0 }
 0x110   : > { %v634_v20 = vmax.f32 %v489_v56, 0.0  ;;  %v493_v21 = vadd.f32 %v492_v3, %v1167_v16  ;;  %v717_v44 = vmul.f32 %v685_v18, %v685_v18  ;;  %v523_v3 = vadd.f32 %v1144_v57, %v1167_v16 }
 0x111   : > { %v494_v10 = vpop.f32.mrf.mxu0  ;;  %v1228_v62 = vpop.f32.mrf.mxu1 }
 0x112   : > { %v495_v22 = vadd.f32 %v494_v10, %v1163_v13  ;;  %v686_v38 = vsub.f32 %v633_v30, %v634_v20  ;;  %v635_v39 = vmax.f32 %v493_v21, 0.0  ;;  %v749_v6 = vadd.f32 %v748_v54, %v717_v44 }
 0x113   : > { %v498_v27 = vpop.f32.mrf.mxu0  ;;  %v643_v10 = vmax.f32 %v517_v50, 0.0  ;;  %v644_v20 = vmax.f32 %v519_v51, 0.0  ;;  %v529_v21 = vadd.f32 %v1148_v61, %v1167_v16  ;;  %v1240_v57 = vpop.f32.mrf.mxu1  ;;  %v645_v30 = vmax.f32 %v523_v3, 0.0 }
 0x114   : > { %v636_v31 = vmax.f32 %v495_v22, 0.0  ;;  %v499_v32 = vadd.f32 %v498_v27, %v1167_v16  ;;  %v718_v63 = vmul.f32 %v686_v38, %v686_v38  ;;  %v531_v22 = vadd.f32 %v1150_v0, %v1163_v13 }
 0x115   : > { %v500_v37 = vpop.f32.mrf.mxu0  ;;  %v691_v38 = vsub.f32 %v643_v10, %v644_v20  ;;  %v1249_v44 = vpop.f32.mrf.mxu1  ;;  %v549_v50 = vadd.f32 %v1170_v19, %v1163_v13  ;;  %v555_v3 = vadd.f32 %v1179_v29, %v1163_v13  ;;  %v559_v19 = vadd.f32 %v1182_v35, %v1167_v16 }
 0x116   : > { %v501_v40 = vadd.f32 %v500_v37, %v1163_v13  ;;  %v687_v46 = vsub.f32 %v635_v39, %v636_v31  ;;  %v637_v47 = vmax.f32 %v499_v32, 0.0  ;;  %v750_v26 = vadd.f32 %v749_v6, %v718_v63 }
 0x117   : > { %v504_v45 = vpop.f32.mrf.mxu0  ;;  %v646_v31 = vmax.f32 %v525_v4, 0.0  ;;  %v535_v32 = vadd.f32 %v1152_v2, %v1167_v16  ;;  %v647_v39 = vmax.f32 %v529_v21, 0.0  ;;  %v651_v63 = vmax.f32 %v541_v43, 0.0 }
 0x118   : > { %v638_v48 = vmax.f32 %v501_v40, 0.0  ;;  %v505_v41 = vadd.f32 %v504_v45, %v1167_v16  ;;  %v719_v53 = vmul.f32 %v687_v46, %v687_v46  ;;  %v648_v40 = vmax.f32 %v531_v22, 0.0 }
 0x119   : > { %v506_v56 = vpop.f32.mrf.mxu0  ;;  %v543_v45 = vadd.f32 %v1158_v11, %v1163_v13  ;;  %v553_v11 = vadd.f32 %v1175_v24, %v1167_v16  ;;  %v565_v10 = vadd.f32 %v1190_v49, %v1167_v16  ;;  %v567_v24 = vadd.f32 %v1194_v60, %v1163_v13 }
 0x11a   : > { %v688_v1 = vsub.f32 %v637_v47, %v638_v48  ;;  %v507_v58 = vadd.f32 %v506_v56, %v1163_v13  ;;  %v639_v12 = vmax.f32 %v505_v41, 0.0  ;;  %v751_v61 = vadd.f32 %v750_v26, %v719_v53 }
 0x11b   : > { %v510_v7 = vpop.f32.mrf.mxu0  ;;  %v692_v47 = vsub.f32 %v645_v30, %v646_v31  ;;  %v649_v48 = vmax.f32 %v535_v32, 0.0  ;;  %v547_v41 = vadd.f32 %v1165_v15, %v1167_v16  ;;  %v723_v56 = vmul.f32 %v691_v38, %v691_v38 }
 0x11c   : > { %v640_v14 = vmax.f32 %v507_v58, 0.0  ;;  %v511_v55 = vadd.f32 %v510_v7, %v1167_v16  ;;  %v720_v59 = vmul.f32 %v688_v1, %v688_v1  ;;  %v693_v8 = vsub.f32 %v647_v39, %v648_v40  ;;  %v596_v1 = vpop.f32.mrf.mxu1 }
 0x11d   : > { %v512_v25 = vpop.f32.mrf.mxu0  ;;  %v652_v58 = vmax.f32 %v543_v45, 0.0  ;;  %v724_v6 = vmul.f32 %v692_v47, %v692_v47  ;;  %v694_v7 = vsub.f32 %v649_v48, %v650_v5  ;;  %v653_v15 = vmax.f32 %v547_v41, 0.0 }
 0x11e   : > { %v689_v18 = vsub.f32 %v639_v12, %v640_v14  ;;  %v513_v27 = vadd.f32 %v512_v25, %v1163_v13  ;;  %v641_v37 = vmax.f32 %v511_v55, 0.0  ;;  %v752_v46 = vadd.f32 %v751_v61, %v720_v59  ;;  %v600_v29 = vpop.f32.mrf.mxu1 }
 0x11f   : > { %v654_v53 = vmax.f32 %v549_v50, 0.0  ;;  %v561_v12 = vadd.f32 %v1186_v42, %v1163_v13  ;;  %v725_v55 = vmul.f32 %v693_v8, %v693_v8  ;;  %v695_v20 = vsub.f32 %v651_v63, %v652_v58 }
 0x120   : > { %v721_v36 = vmul.f32 %v689_v18, %v689_v18  ;;  %v642_v0 = vmax.f32 %v513_v27, 0.0  ;;  %v655_v21 = vmax.f32 %v553_v11, 0.0  ;;  %v656_v22 = vmax.f32 %v555_v3, 0.0  ;;  %v602_v33 = vpop.f32.mrf.mxu1 }
 0x121   : > { %v726_v26 = vmul.f32 %v694_v7, %v694_v7  ;;  %v571_v35 = vadd.f32 %v1198_v9, %v1167_v16  ;;  %v573_v42 = vadd.f32 %v1202_v23, %v1163_v13  ;;  %v696_v59 = vsub.f32 %v653_v15, %v654_v53 }
 0x122   : > { %v690_v2 = vsub.f32 %v641_v37, %v642_v0  ;;  %v753_v51 = vadd.f32 %v752_v46, %v721_v36  ;;  %v657_v18 = vmax.f32 %v559_v19, 0.0  ;;  %v658_v27 = vmax.f32 %v561_v12, 0.0 }
 0x123   : > { %v659_v49 = vmax.f32 %v565_v10, 0.0  ;;  %v660_v31 = vmax.f32 %v567_v24, 0.0  ;;  %v577_v60 = vadd.f32 %v1206_v34, %v1167_v16  ;;  %v579_v32 = vadd.f32 %v1211_v52, %v1163_v13 }
 0x124   : > { %v722_v54 = vmul.f32 %v690_v2, %v690_v2  ;;  %v727_v61 = vmul.f32 %v695_v20, %v695_v20  ;;  %v697_v36 = vsub.f32 %v655_v21, %v656_v22  ;;  %v661_v9 = vmax.f32 %v571_v35, 0.0  ;;  %v606_v2 = vpop.f32.mrf.mxu1 }
 0x125   : > { %v662_v0 = vmax.f32 %v573_v42, 0.0  ;;  %v583_v23 = vadd.f32 %v1215_v17, %v1167_v16  ;;  %v585_v38 = vadd.f32 %v1220_v28, %v1163_v13  ;;  %v728_v39 = vmul.f32 %v696_v59, %v696_v59 }
 0x126   : > { %v754_v4 = vadd.f32 %v753_v51, %v722_v54  ;;  %v698_v40 = vsub.f32 %v657_v18, %v658_v27  ;;  %v699_v45 = vsub.f32 %v659_v49, %v660_v31  ;;  %v663_v34 = vmax.f32 %v577_v60, 0.0 }
 0x127   : > { %v664_v46 = vmax.f32 %v579_v32, 0.0  ;;  %v589_v52 = vadd.f32 %v1228_v62, %v1167_v16  ;;  %v729_v47 = vmul.f32 %v697_v36, %v697_v36  ;;  %v591_v5 = vadd.f32 %v1240_v57, %v1163_v13  ;;  %v608_v62 = vpop.f32.mrf.mxu1 }
 0x128   : > { %v755_v14 = vadd.f32 %v754_v4, %v723_v56  ;;  %v700_v41 = vsub.f32 %v661_v9, %v662_v0  ;;  %v665_v17 = vmax.f32 %v583_v23, 0.0  ;;  %v666_v50 = vmax.f32 %v585_v38, 0.0 }
 0x129   : > { %v595_v28 = vadd.f32 %v1249_v44, %v1167_v16  ;;  %v730_v51 = vmul.f32 %v698_v40, %v698_v40  ;;  %v597_v56 = vadd.f32 %v596_v1, %v1163_v13  ;;  %v731_v8 = vmul.f32 %v699_v45, %v699_v45 }
 0x12a   : > { %v756_v25 = vadd.f32 %v755_v14, %v724_v6  ;;  %v701_v63 = vsub.f32 %v663_v34, %v664_v46  ;;  %v667_v58 = vmax.f32 %v589_v52, 0.0  ;;  %v668_v3 = vmax.f32 %v591_v5, 0.0 }
 0x12b   : > { %v601_v4 = vadd.f32 %v600_v29, %v1167_v16  ;;  %v603_v57 = vadd.f32 %v602_v33, %v1163_v13  ;;  %v732_v6 = vmul.f32 %v700_v41, %v700_v41  ;;  %v702_v7 = vsub.f32 %v665_v17, %v666_v50 }
 0x12c   : > { %v757_v30 = vadd.f32 %v756_v25, %v725_v55  ;;  %v669_v15 = vmax.f32 %v595_v28, 0.0  ;;  %v670_v44 = vmax.f32 %v597_v56, 0.0  ;;  %v607_v19 = vadd.f32 %v606_v2, %v1167_v16 }
 0x12d   : > { %v609_v1 = vadd.f32 %v608_v62, %v1163_v13  ;;  %v733_v12 = vmul.f32 %v701_v63, %v701_v63  ;;  %v703_v55 = vsub.f32 %v667_v58, %v668_v3  ;;  %v671_v10 = vmax.f32 %v601_v4, 0.0 }
 0x12e   : > { %v758_v37 = vadd.f32 %v757_v30, %v726_v26  ;;  %v672_v24 = vmax.f32 %v603_v57, 0.0  ;;  %v734_v20 = vmul.f32 %v702_v7, %v702_v7  ;;  %v704_v21 = vsub.f32 %v669_v15, %v670_v44 }
 0x12f   : > { %v673_v22 = vmax.f32 %v607_v19, 0.0  ;;  %v674_v25 = vmax.f32 %v609_v1, 0.0  ;;  %v735_v35 = vmul.f32 %v703_v55, %v703_v55 }
 0x130   : > { %v759_v43 = vadd.f32 %v758_v37, %v727_v61  ;;  %v705_v42 = vsub.f32 %v671_v10, %v672_v24  ;;  %v736_v18 = vmul.f32 %v704_v21, %v704_v21 }
 0x131   : > { %v706_v16 = vsub.f32 %v673_v22, %v674_v25 }
 0x132   : > { %v760_v48 = vadd.f32 %v759_v43, %v728_v39  ;;  %v737_v27 = vmul.f32 %v705_v42, %v705_v42 }
 0x133   : > { %v738_v49 = vmul.f32 %v706_v16, %v706_v16 }
 0x134   : > { %v761_v54 = vadd.f32 %v760_v48, %v729_v47 }
 0x136   : > { %v762_v11 = vadd.f32 %v761_v54, %v730_v51 }
 0x138   : > { %v763_v53 = vadd.f32 %v762_v11, %v731_v8 }
 0x13a   : > { %v764_v14 = vadd.f32 %v763_v53, %v732_v6 }
 0x13c   : > { %v765_v29 = vadd.f32 %v764_v14, %v733_v12 }
 0x13e   : > { %v766_v26 = vadd.f32 %v765_v29, %v734_v20 }
 0x140   : > { %v767_v59 = vadd.f32 %v766_v26, %v735_v35 }
 0x142   : > { %v768_v13 = vadd.f32 %v767_v59, %v736_v18 }
 0x144   : > { %v769_v30 = vadd.f32 %v768_v13, %v737_v27 }
 0x146   : > { %v770_v31 = vadd.f32 %v769_v30, %v738_v49 }
 0x148   : > { %772 = vst [vmem:[%s189_s16] sm:$0xff] %v770_v31 }
 0x149 PF: > { %s13_s14 = sadd.s32 1, %s941_s14   ;;  %s1310_s12 = smov %s937_s13 }
 0x14a   : > { %p10_p6 = scmp.ge.s32.totalorder %s13_s14, 4   ;;  %s1311_s13 = smov %s1313_s15 }
 0x14c   :  { %12 = sbr.rel (!%p10_p6) target bundleno = 2 (0x2), region = 66 }

</bundles_post_ra>
